<compile_context>
chip_gen: v7x
topology: tpu7x:2x2x1
jax: 0.10.0
libtpu: 0.0.40
codegen_flags: <defaults>
</compile_context>

<pallas_src>
import functools

import jax
import jax.numpy as jnp
from jax.experimental import pallas as pl
from jax.experimental.pallas import tpu as pltpu


def _round_up(x, m):
    return (x + m - 1) // m * m


def _ensemble_kernel(x_ref, w_ref, b_ref, o_ref, acc_ref, *,
                     num_models, c_pad, num_classes):
    """Grid = (batch tiles ['parallel'], K tiles over F ['arbitrary', last]).

    x_ref:   (TB, TK)        bf16 input tile
    w_ref:   (TK, M*Cpad)    bf16 fused weight K-slab
    b_ref:   (1,  M*Cpad)    f32 fused bias (pad classes = -1e30)
    o_ref:   (TB, Cpad)      f32 ensemble probabilities (pad classes ~ 0)
    acc_ref: (TB, M*Cpad)    f32 logits accumulator (VMEM scratch)
    """
    k = pl.program_id(1)

    @pl.when(k == 0)
    def _():
        acc_ref[...] = jnp.zeros_like(acc_ref)

    # Single fused MXU matmul for all ensemble members (bf16 in, f32 acc).
    acc_ref[...] += jnp.dot(x_ref[...], w_ref[...],
                            preferred_element_type=jnp.float32)

    @pl.when(k == pl.num_programs(1) - 1)
    def _():
        tb = acc_ref.shape[0]
        logits = acc_ref[...] + b_ref[...]                  # (TB, M*Cpad) f32
        # Clean lane-tile view: Cpad == 128 so the last axis is a full lane tile.
        logits = logits.reshape(tb, num_models, c_pad)

        # Per-model softmax over the class axis (PyTorch dim=1).
        # Padded class columns carry a -1e30 bias -> exp() == 0.
        z = logits - jnp.max(logits, axis=-1, keepdims=True)
        e = jnp.exp(z)
        p = e * pl.reciprocal(jnp.sum(e, axis=-1, keepdims=True), approx=True)

        vote = jnp.sum(p, axis=1)                           # (TB, Cpad)

        # Final softmax over the real classes only: mask pad lanes to -1e30.
        col = jax.lax.broadcasted_iota(jnp.int32, vote.shape, 1)
        vote = jnp.where(col < num_classes, vote, -1e30)
        z2 = vote - jnp.max(vote, axis=-1, keepdims=True)
        e2 = jnp.exp(z2)
        o_ref[...] = (e2 / jnp.sum(e2, axis=-1, keepdims=True)).astype(o_ref.dtype)


def ensemble_for_saliency(x_nchw, weights, biases, *,
                          tb_cap=256, k_budget_bytes=4 * 1024 * 1024):
    """x_nchw: (B, Cin, H, W); weights: (M, F, C); biases: (M, 1, C) -> (B, C)."""
    M, F, C = weights.shape
    B = x_nchw.shape[0]
    x_flat = x_nchw.reshape(B, -1)
    assert x_flat.shape[1] == F

    # --- layout constants -------------------------------------------------
    c_pad = _round_up(max(C, 128), 128)      # lane-dense class axis
    n_fused = M * c_pad                      # fused output width (multiple of 128)

    # Batch tile: sublane aligned, capped (256 fills the v6e/v7x MXU; on v5e a
    # 128 cap would also be fine).
    tb = tb_cap if B > tb_cap else _round_up(B, 8)
    b_pad = _round_up(B, tb)

    # F padding + K tiling: single K step when the fused bf16 weight slab is
    # small; otherwise tile K at 512 so the double-buffered slab stays well
    # inside v7x's (smaller) scoped VMEM.
    f_pad = _round_up(F, 512)
    tk = f_pad if f_pad * n_fused * 2 <= k_budget_bytes else 512
    num_k = f_pad // tk

    # --- wrapper-side operand preparation (layout plumbing, not compute) ---
    x_p = jnp.zeros((b_pad, f_pad), jnp.float32)
    x_p = x_p.at[:B, :F].set(x_flat.astype(jnp.float32)).astype(jnp.bfloat16)

    # Fused weights: (F, M, C) zero-padded -> (Fp, M*Cpad), bf16.
    w_t = jnp.transpose(weights.astype(jnp.float32), (1, 0, 2))        # (F, M, C)
    w_p = jnp.zeros((f_pad, M, c_pad), jnp.float32).at[:F, :, :C].set(w_t)
    w_p = w_p.reshape(f_pad, n_fused).astype(jnp.bfloat16)

    # Fused bias: (1, M*Cpad) f32; padded class columns get -1e30 (exp -> 0).
    b_in = biases.reshape(M, C).astype(jnp.float32)
    b_p = jnp.full((M, c_pad), -1e30, jnp.float32).at[:, :C].set(b_in)
    b_p = b_p.reshape(1, n_fused)

    kernel = functools.partial(_ensemble_kernel,
                               num_models=M, c_pad=c_pad, num_classes=C)

    out_padded = pl.pallas_call(
        kernel,
        out_shape=jax.ShapeDtypeStruct((b_pad, c_pad), jnp.float32),
        grid_spec=pltpu.PrefetchScalarGridSpec(
            num_scalar_prefetch=0,
            grid=(b_pad // tb, num_k),
            in_specs=[
                pl.BlockSpec((tb, tk), lambda b, k: (b, k)),        # x tile
                pl.BlockSpec((tk, n_fused), lambda b, k: (k, 0)),   # fused W K-slab
                pl.BlockSpec((1, n_fused), lambda b, k: (0, 0)),    # fused bias
            ],
            out_specs=pl.BlockSpec((tb, c_pad), lambda b, k: (b, 0)),
            scratch_shapes=[pltpu.VMEM((tb, n_fused), jnp.float32)],
        ),
        compiler_params=pltpu.CompilerParams(
            dimension_semantics=("parallel", "arbitrary"),
            vmem_limit_bytes=32 * 1024 * 1024,
        ),
    )(x_p, w_p, b_p)

    return out_padded[:B, :C]


def _reference(x_flat_f32, weights, biases):
    vote = jnp.zeros((x_flat_f32.shape[0], weights.shape[2]), jnp.float32)
    for m in range(weights.shape[0]):
        logits = x_flat_f32 @ weights[m] + biases[m, 0]
        vote = vote + jax.nn.softmax(logits, axis=-1)
    return jax.nn.softmax(vote, axis=-1)


if __name__ == "__main__":
    # Small deterministic problem: batch=2, Cin=4, H=W=16 -> F=1024,
    # num_classes=10, ensemble of M=3 linear models.
    B, Cin, H, W = 2, 4, 16, 16
    F_ = Cin * H * W
    num_classes = 10
    M = 3

    key = jax.random.PRNGKey(0)
    kx, kw, kb = jax.random.split(key, 3)
    x = jax.random.normal(kx, (B, Cin, H, W), jnp.float32)
    weights = 0.05 * jax.random.normal(kw, (M, F_, num_classes), jnp.float32)
    biases = 0.1 * jax.random.normal(kb, (M, 1, num_classes), jnp.float32)

    out = ensemble_for_saliency(x, weights, biases)
    out = jax.block_until_ready(out)

    # Reference on the same bf16-rounded operands the kernel feeds the MXU;
    # tolerance accounts for the approx-reciprocal inner softmax (~1e-3).
    x_bf = x.reshape(B, -1).astype(jnp.bfloat16).astype(jnp.float32)
    w_bf = weights.astype(jnp.bfloat16).astype(jnp.float32)
    ref = _reference(x_bf, w_bf, biases)

    assert out.shape == (B, num_classes)
    assert jnp.allclose(out, ref, atol=3e-3, rtol=3e-3), "mismatch vs JAX reference"
    # rows sum to 1 over the real classes (pad-lane probabilities are ~0)
    assert jnp.allclose(jnp.sum(out, axis=-1), 1.0, atol=1e-5)

    print("KERNEL_OK")
</pallas_src>

<mosaic_0001>
module attributes {stable_mosaic.version = 11 : i64} {
  func.func @_ensemble_kernel(%arg0: i32, %arg1: i32, %arg2: memref<8x1024xbf16, #tpu.memory_space<vmem>>, %arg3: memref<1024x384xbf16, #tpu.memory_space<vmem>>, %arg4: memref<1x384xf32, #tpu.memory_space<vmem>>, %arg5: memref<8x128xf32, #tpu.memory_space<vmem>>, %arg6: memref<8x384xf32, #tpu.memory_space<vmem>>) attributes {dimension_semantics = [#tpu.dimension_semantics<parallel>, #tpu.dimension_semantics<arbitrary>], iteration_bounds = array<i64: 1, 1>, scalar_prefetch = 0 : i64, scratch_operands = 1 : i64, tpu.core_type = #tpu.core_type<tc>, window_params = [{transform_indices = @transform_0, window_bounds = array<i64: 8, 1024>}, {transform_indices = @transform_1, window_bounds = array<i64: 1024, 384>}, {pipeline_mode = #tpu.pipeline_mode<synchronous>, transform_indices = @transform_2, window_bounds = array<i64: 1, 384>}, {transform_indices = @transform_3, window_bounds = array<i64: 8, 128>}]} {
    %c0_i32 = arith.constant 0 : i32
    %0 = arith.cmpi eq, %arg1, %c0_i32 : i32
    %1 = arith.extui %0 : i1 to i32
    %c0_i32_0 = arith.constant 0 : i32
    %2 = arith.cmpi ne, %1, %c0_i32_0 : i32
    scf.if %2 {
      %cst_10 = arith.constant 0.000000e+00 : f32
      %12 = vector.broadcast %cst_10 : f32 to vector<8x384xf32>
      %c0_11 = arith.constant 0 : index
      %c0_12 = arith.constant 0 : index
      %13 = vector.load %arg6[%c0_11, %c0_12] : memref<8x384xf32, #tpu.memory_space<vmem>>, vector<8x384xf32>
      tpu.vector_store %arg6[%c0_11, %c0_12], %12 {strides = array<i32>} : memref<8x384xf32, #tpu.memory_space<vmem>>, vector<8x384xf32>,
    } else {
    }
    %c0 = arith.constant 0 : index
    %c0_1 = arith.constant 0 : index
    %3 = vector.load %arg6[%c0, %c0_1] : memref<8x384xf32, #tpu.memory_space<vmem>>, vector<8x384xf32>
    %c0_2 = arith.constant 0 : index
    %c0_3 = arith.constant 0 : index
    %4 = vector.load %arg2[%c0_2, %c0_3] : memref<8x1024xbf16, #tpu.memory_space<vmem>>, vector<8x1024xbf16>
    %c0_4 = arith.constant 0 : index
    %c0_5 = arith.constant 0 : index
    %5 = vector.load %arg3[%c0_4, %c0_5] : memref<1024x384xbf16, #tpu.memory_space<vmem>>, vector<1024x384xbf16>
    %cst = arith.constant dense<0.000000e+00> : vector<8x384xf32>
    %6 = tpu.matmul %4, %5, %cst {dimension_numbers = #tpu.dot_dimension_numbers<[1], [0], [0], [1], [0, 0, 1, 1], [], []>} : vector<8x1024xbf16>, vector<1024x384xbf16>, vector<8x384xf32> -> vector<8x384xf32>
    %7 = arith.addf %3, %6 : vector<8x384xf32>
    %c0_6 = arith.constant 0 : index
    %c0_7 = arith.constant 0 : index
    %8 = vector.load %arg6[%c0_6, %c0_7] : memref<8x384xf32, #tpu.memory_space<vmem>>, vector<8x384xf32>
    tpu.vector_store %arg6[%c0_6, %c0_7], %7 {strides = array<i32>} : memref<8x384xf32, #tpu.memory_space<vmem>>, vector<8x384xf32>,
    %c0_i32_8 = arith.constant 0 : i32
    %9 = arith.cmpi eq, %arg1, %c0_i32_8 : i32
    %10 = arith.extui %9 : i1 to i32
    %c0_i32_9 = arith.constant 0 : i32
    %11 = arith.cmpi ne, %10, %c0_i32_9 : i32
    scf.if %11 {
      %c0_10 = arith.constant 0 : index
      %c0_11 = arith.constant 0 : index
      %12 = vector.load %arg6[%c0_10, %c0_11] : memref<8x384xf32, #tpu.memory_space<vmem>>, vector<8x384xf32>
      %c0_12 = arith.constant 0 : index
      %c0_13 = arith.constant 0 : index
      %13 = vector.load %arg4[%c0_12, %c0_13] : memref<1x384xf32, #tpu.memory_space<vmem>>, vector<1x384xf32>
      %14 = vector.broadcast %13 : vector<1x384xf32> to vector<8x384xf32>
      %15 = arith.addf %12, %14 : vector<8x384xf32>
      %16 = vector.shape_cast %15 : vector<8x384xf32> to vector<8x3x128xf32>
      %cst_14 = arith.constant dense<0xFF800000> : vector<8x3xf32>
      %17 = vector.multi_reduction <maximumf>, %16, %cst_14 [2] : vector<8x3x128xf32> to vector<8x3xf32>
      %18 = vector.shape_cast %17 : vector<8x3xf32> to vector<8x3x1xf32>
      %19 = vector.broadcast %18 : vector<8x3x1xf32> to vector<8x3x128xf32>
      %20 = arith.subf %16, %19 : vector<8x3x128xf32>
      %21 = math.exp %20 : vector<8x3x128xf32>
      %cst_15 = arith.constant dense<0.000000e+00> : vector<8x3xf32>
      %22 = vector.multi_reduction <add>, %21, %cst_15 [2] : vector<8x3x128xf32> to vector<8x3xf32>
      %23 = vector.shape_cast %22 : vector<8x3xf32> to vector<8x3x1xf32>
      %24 = tpu.reciprocal %23 {approx = true} : vector<8x3x1xf32> -> vector<8x3x1xf32>
      %25 = vector.broadcast %24 : vector<8x3x1xf32> to vector<8x3x128xf32>
      %26 = arith.mulf %21, %25 : vector<8x3x128xf32>
      %cst_16 = arith.constant dense<0.000000e+00> : vector<8x128xf32>
      %27 = vector.multi_reduction <add>, %26, %cst_16 [1] : vector<8x3x128xf32> to vector<8x128xf32>
      %28 = tpu.iota {dimensions = array<i32: 1>} : vector<8x128xi32>
      %c10_i32 = arith.constant 10 : i32
      %29 = vector.broadcast %c10_i32 : i32 to vector<8x128xi32>
      %30 = arith.cmpi slt, %28, %29 : vector<8x128xi32>
      %cst_17 = arith.constant -1.000000e+30 : f32
      %31 = vector.broadcast %cst_17 : f32 to vector<8x128xf32>
      %32 = arith.select %30, %27, %31 : vector<8x128xi1>, vector<8x128xf32>
      %cst_18 = arith.constant dense<0xFF800000> : vector<8xf32>
      %33 = vector.multi_reduction <maximumf>, %32, %cst_18 [1] : vector<8x128xf32> to vector<8xf32>
      %34 = vector.shape_cast %33 : vector<8xf32> to vector<8x1xf32>
      %35 = vector.broadcast %34 : vector<8x1xf32> to vector<8x128xf32>
      %36 = arith.subf %32, %35 : vector<8x128xf32>
      %37 = math.exp %36 : vector<8x128xf32>
      %cst_19 = arith.constant dense<0.000000e+00> : vector<8xf32>
      %38 = vector.multi_reduction <add>, %37, %cst_19 [1] : vector<8x128xf32> to vector<8xf32>
      %39 = vector.shape_cast %38 : vector<8xf32> to vector<8x1xf32>
      %40 = vector.broadcast %39 : vector<8x1xf32> to vector<8x128xf32>
      %41 = arith.divf %37, %40 : vector<8x128xf32>
      %c0_20 = arith.constant 0 : index
      %c0_21 = arith.constant 0 : index
      %42 = vector.load %arg5[%c0_20, %c0_21] : memref<8x128xf32, #tpu.memory_space<vmem>>, vector<8x128xf32>
      tpu.vector_store %arg5[%c0_20, %c0_21], %41 {strides = array<i32>} : memref<8x128xf32, #tpu.memory_space<vmem>>, vector<8x128xf32>,
    } else {
    }
    return
  }
  func.func @transform_0(%arg0: i32, %arg1: i32) -> (i32, i32) {
    %c0_i32 = arith.constant 0 : i32
    return %arg0, %arg1 : i32, i32
  }
  func.func @transform_1(%arg0: i32, %arg1: i32) -> (i32, i32) {
    %c0_i32 = arith.constant 0 : i32
    %c0_i32_0 = arith.constant 0 : i32
    return %arg1, %c0_i32 : i32, i32
  }
  func.func @transform_2(%arg0: i32, %arg1: i32) -> (i32, i32) {
    %c0_i32 = arith.constant 0 : i32
    %c0_i32_0 = arith.constant 0 : i32
    %c0_i32_1 = arith.constant 0 : i32
    return %c0_i32, %c0_i32_0 : i32, i32
  }
  func.func @transform_3(%arg0: i32, %arg1: i32) -> (i32, i32) {
    %c0_i32 = arith.constant 0 : i32
    %c0_i32_0 = arith.constant 0 : i32
    return %arg0, %c0_i32 : i32, i32
  }
}

</mosaic_0001>

<bundles_post_ra>
// kernel: tpu_custom_call.1
= control target key start
LH: loop header
LB: loop body
LE: loop exit
PB: predicated region body
PF: predicated region fallthrough
CT: control target
= control target key end

     0   :  { %8 = vsyncpa [#allocation4], 0  ;;  %s2803_s0 = inlined_call_operand.hbm [shape: bf16[8,1024], index: 0, kind: input, shape index: {}]   ;;  %s2804_s1 = inlined_call_operand.hbm [shape: bf16[1024,384], index: 1, kind: input, shape index: {}]   ;;  %s2805_s2 = inlined_call_operand.vmem [shape: f32[1,384], index: 2, kind: input, shape index: {}]   ;;  %s2806_s3 = inlined_call_operand.hbm [shape: f32[8,128], index: 3, kind: output, shape index: {}]  }
   0x1   :  { %9 = vsyncpa [#allocation7], 0 }
   0x2   :  { %10 = vsyncpa [#allocation5], 0  ;;  %s2653_s12 = smov [#allocation3]   ;;  %s2654_s14 = smov [#allocation6]  }
   0x3   :  { %s17_s13 = sshll.u32 %s2653_s12, 4  ;;  %s26_s15 = sshll.u32 %s2654_s14, 4  ;;  %s18_s13 = int_to_ptr.vmem [resolvable:$true] %s17_s13  ;;  %s2681_s15 = int_to_ptr.vmem [resolvable:$true] %s26_s15 }
   0x4   :  { %s2581_s18 = scalar_lea.hbm %s2803_s0, 512 }
   0x5   :  { %p2582_p0 = scmp.ne.s32.totalorder %s2803_s0, %s2581_s18  ;;  %p2585_p1 = scmp.lt.u32.totalorder %s2581_s18, %s2803_s0 }
   0x7   :  { %p2587_p2 = pnand %p2585_p1, %p2582_p0 }
   0x9   :  { %2590 = shalt.err (!%p2587_p2)
}
   0xa   :  { %s2591_s23 = scalar_lea.vmem %s18_s13, 512  ;;  %p2596_p4 = scmp.lt.s32.totalorder %s18_s13, %s18_s13 }
   0xb   :  { %p2592_p3 = scmp.ne.s32.totalorder %s18_s13, %s2591_s23  ;;  %p2597_p5 = scmp.lt.s32.totalorder %s2591_s23, %s2591_s23 }
   0xd   :  { %p2598_p6 = por %p2597_p5, %p2596_p4 }
   0xf   :  { %p2599_p7 = pnand %p2598_p6, %p2592_p3 }
  0x11   :  { %2602 = shalt.err (!%p2599_p7)
}
  0x12   :  { %20 = dma.hbm_to_vmem [thread:$0]  %s2803_s0, 512, %s18_s13, [#allocation4]  }
  0x13   :  { %s2603_s28 = scalar_lea.hbm %s2804_s1, 24576 }
  0x14   :  { %p2604_p8 = scmp.ne.s32.totalorder %s2804_s1, %s2603_s28  ;;  %p2607_p9 = scmp.lt.u32.totalorder %s2603_s28, %s2804_s1 }
  0x16   :  { %p2609_p10 = pnand %p2607_p9, %p2604_p8 }
  0x18   :  { %2612 = shalt.err (!%p2609_p10)
}
  0x19   :  { %s2613_s6 = scalar_lea.vmem %s2681_s15, 24576  ;;  %p2618_p12 = scmp.lt.s32.totalorder %s2681_s15, %s2681_s15 }
  0x1a   :  { %p2614_p11 = scmp.ne.s32.totalorder %s2681_s15, %s2613_s6  ;;  %p2619_p13 = scmp.lt.s32.totalorder %s2613_s6, %s2613_s6 }
  0x1c   :  { %p2620_p0 = por %p2619_p13, %p2618_p12 }
  0x1e   :  { %p2621_p1 = pnand %p2620_p0, %p2614_p11 }
  0x20   :  { %2624 = shalt.err (!%p2621_p1)
}
  0x21   :  { %s2655_s0 = smov 192   ;;  %s2656_s7 = smov 12  }
  0x22   :  { %32 = dma.hbm_to_vmem [thread:$0]  %s2804_s1, 24576, %s2681_s15, [#allocation7], %s2655_s0, %s2655_s0, %s2656_s7  }
  0x23   :  { %2647 = dma.done.wait [#allocation4], 512  }
  0x24   :  { %2648 = vsyncadd [#allocation4], 4294966784 }
  0x25   :  { %2649 = dma.done.wait [#allocation7], 24576  }
  0x26   :  { %2650 = vsyncadd [#allocation7], 4294942720  ;;  %v2281_v0 = vld [vmem:[#allocation6 + $0x4] ss:$12 sps:$4 sm:$0xff]   ;;  %v2285_v2 = vld [vmem:[#allocation6] ss:$12 sps:$4 sm:$0xff]  }
  0x27   :  { %v2283_v1 = vld [vmem:[#allocation6 + $0x184] ss:$12 sps:$4 sm:$0xff]   ;;  %1364 = vmatprep.subr.bf16.mxu0 %v2281_v0  ;;  %v2286_v3 = vld [vmem:[#allocation6 + $0x180] ss:$12 sps:$4 sm:$0xff]   ;;  %v2287_v4 = vld [vmem:[#allocation6 + $0x1c] ss:$12 sps:$4 sm:$0xff]  }
  0x28   :  { %1405 = vmatprep.subr.bf16.mxu1 %v2283_v1  ;;  %1365 = vmatpush1.bf16.msra.mxu0 %v2285_v2  ;;  %v2289_v5 = vld [vmem:[#allocation6 + $0x19c] ss:$12 sps:$4 sm:$0xff]   ;;  %v2291_v6 = vld [vmem:[#allocation6 + $0x18] ss:$12 sps:$4 sm:$0xff]   ;;  %v2293_v8 = vld [vmem:[#allocation6 + $0x34] ss:$12 sps:$4 sm:$0xff]  }
  0x29   :  { %1406 = vmatpush1.bf16.msra.mxu1 %v2286_v3  ;;  %1366 = vmatprep.subr.bf16.mxu0 %v2287_v4  ;;  %v2292_v7 = vld [vmem:[#allocation6 + $0x198] ss:$12 sps:$4 sm:$0xff]   ;;  %v2295_v9 = vld [vmem:[#allocation6 + $0x1b4] ss:$12 sps:$4 sm:$0xff]   ;;  %v2297_v10 = vld [vmem:[#allocation6 + $0x30] ss:$12 sps:$4 sm:$0xff]  }
  0x2a   :  { %1407 = vmatprep.subr.bf16.mxu1 %v2289_v5  ;;  %v2298_v11 = vld [vmem:[#allocation6 + $0x1b0] ss:$12 sps:$4 sm:$0xff]   ;;  %v2299_v12 = vld [vmem:[#allocation6 + $0x4c] ss:$12 sps:$4 sm:$0xff]   ;;  %v2303_v14 = vld [vmem:[#allocation6 + $0x48] ss:$12 sps:$4 sm:$0xff]  }
  0x2b   :  { %v2301_v13 = vld [vmem:[#allocation6 + $0x1cc] ss:$12 sps:$4 sm:$0xff]   ;;  %v2304_v15 = vld [vmem:[#allocation6 + $0x1c8] ss:$12 sps:$4 sm:$0xff]   ;;  %v2305_v16 = vld [vmem:[#allocation6 + $0x64] ss:$12 sps:$4 sm:$0xff]  }
  0x2c   :  { %1367 = vmatpush1.bf16.msra.mxu0 %v2291_v6  ;;  %v2307_v17 = vld [vmem:[#allocation6 + $0x1e4] ss:$12 sps:$4 sm:$0xff]   ;;  %v2309_v18 = vld [vmem:[#allocation6 + $0x60] ss:$12 sps:$4 sm:$0xff]   ;;  %v2311_v20 = vld [vmem:[#allocation6 + $0x7c] ss:$12 sps:$4 sm:$0xff]  }
  0x2d   :  { %1408 = vmatpush1.bf16.msra.mxu1 %v2292_v7  ;;  %1368 = vmatprep.subr.bf16.mxu0 %v2293_v8  ;;  %v2310_v19 = vld [vmem:[#allocation6 + $0x1e0] ss:$12 sps:$4 sm:$0xff]   ;;  %v2313_v21 = vld [vmem:[#allocation6 + $0x1fc] ss:$12 sps:$4 sm:$0xff]   ;;  %v2315_v22 = vld [vmem:[#allocation6 + $0x78] ss:$12 sps:$4 sm:$0xff]  }
  0x2e   :  { %1409 = vmatprep.subr.bf16.mxu1 %v2295_v9  ;;  %v2316_v23 = vld [vmem:[#allocation6 + $0x1f8] ss:$12 sps:$4 sm:$0xff]   ;;  %v2317_v24 = vld [vmem:[#allocation6 + $0x94] ss:$12 sps:$4 sm:$0xff]   ;;  %v2321_v26 = vld [vmem:[#allocation6 + $0x90] ss:$12 sps:$4 sm:$0xff]  }
  0x2f   :  { %v2319_v25 = vld [vmem:[#allocation6 + $0x214] ss:$12 sps:$4 sm:$0xff]   ;;  %v2322_v27 = vld [vmem:[#allocation6 + $0x210] ss:$12 sps:$4 sm:$0xff]   ;;  %v2323_v28 = vld [vmem:[#allocation6 + $0xac] ss:$12 sps:$4 sm:$0xff]  }
  0x30   :  { %1369 = vmatpush1.bf16.msra.mxu0 %v2297_v10  ;;  %v2325_v29 = vld [vmem:[#allocation6 + $0x22c] ss:$12 sps:$4 sm:$0xff]   ;;  %v2327_v30 = vld [vmem:[#allocation6 + $0xa8] ss:$12 sps:$4 sm:$0xff]   ;;  %v2329_v32 = vld [vmem:[#allocation6 + $0xc4] ss:$12 sps:$4 sm:$0xff]  }
  0x31   :  { %1410 = vmatpush1.bf16.msra.mxu1 %v2298_v11  ;;  %1370 = vmatprep.subr.bf16.mxu0 %v2299_v12  ;;  %v2328_v31 = vld [vmem:[#allocation6 + $0x228] ss:$12 sps:$4 sm:$0xff]   ;;  %v2331_v33 = vld [vmem:[#allocation6 + $0x244] ss:$12 sps:$4 sm:$0xff]   ;;  %v2333_v34 = vld [vmem:[#allocation6 + $0xc0] ss:$12 sps:$4 sm:$0xff]  }
  0x32   :  { %1411 = vmatprep.subr.bf16.mxu1 %v2301_v13  ;;  %v2334_v35 = vld [vmem:[#allocation6 + $0x240] ss:$12 sps:$4 sm:$0xff]   ;;  %v2335_v36 = vld [vmem:[#allocation6 + $0xdc] ss:$12 sps:$4 sm:$0xff]   ;;  %v2339_v38 = vld [vmem:[#allocation6 + $0xd8] ss:$12 sps:$4 sm:$0xff]  }
  0x33   :  { %v2337_v37 = vld [vmem:[#allocation6 + $0x25c] ss:$12 sps:$4 sm:$0xff]   ;;  %v2340_v39 = vld [vmem:[#allocation6 + $0x258] ss:$12 sps:$4 sm:$0xff]   ;;  %v2341_v40 = vld [vmem:[#allocation6 + $0xf4] ss:$12 sps:$4 sm:$0xff]  }
  0x34   :  { %1371 = vmatpush1.bf16.msra.mxu0 %v2303_v14  ;;  %v2343_v41 = vld [vmem:[#allocation6 + $0x274] ss:$12 sps:$4 sm:$0xff]   ;;  %v2345_v42 = vld [vmem:[#allocation6 + $0xf0] ss:$12 sps:$4 sm:$0xff]   ;;  %v2347_v44 = vld [vmem:[#allocation6 + $0x10c] ss:$12 sps:$4 sm:$0xff]  }
  0x35   :  { %1412 = vmatpush1.bf16.msra.mxu1 %v2304_v15  ;;  %1372 = vmatprep.subr.bf16.mxu0 %v2305_v16  ;;  %v2346_v43 = vld [vmem:[#allocation6 + $0x270] ss:$12 sps:$4 sm:$0xff]   ;;  %v2349_v45 = vld [vmem:[#allocation6 + $0x28c] ss:$12 sps:$4 sm:$0xff]   ;;  %v52_v46 = vld [vmem:[#allocation3] sm:$0xff]  ;;  %vm1787_vm0 = vcmask 1042432  }
  0x36   :  { %1413 = vmatprep.subr.bf16.mxu1 %v2307_v17  ;;  %v2712_v47 = vcombine.high %v52_v46, %v52_v46  ;;  %v53_v48 = vld [vmem:[#allocation3 + $0x8] sm:$0xff]  ;;  %v2353_v52 = vld [vmem:[#allocation6 + $0x124] ss:$12 sps:$4 sm:$0xff]   ;;  %v2365_v60 = vld [vmem:[#allocation6 + $0x154] ss:$12 sps:$4 sm:$0xff]   ;;  %v2718_v6 = vcombine.low %v52_v46, %v52_v46  ;;  %vm1943_vm1 = vcmask 1041409  }
  0x37   :  { %v2351_v49 = vld [vmem:[#allocation6 + $0x108] ss:$12 sps:$4 sm:$0xff]   ;;  %v2714_v51 = vcombine.high %v53_v48, %v53_v48  ;;  %v2355_v53 = vld [vmem:[#allocation6 + $0x2a4] ss:$12 sps:$4 sm:$0xff]   ;;  %v2357_v54 = vld [vmem:[#allocation6 + $0x120] ss:$12 sps:$4 sm:$0xff]   ;;  %v2720_v7 = vcombine.low %v53_v48, %v53_v48 }
  0x38   :  { %1373 = vmatpush1.bf16.msra.mxu0 %v2309_v18  ;;  %v2352_v50 = vld [vmem:[#allocation6 + $0x288] ss:$12 sps:$4 sm:$0xff]   ;;  %1396 = vmatprep.mubr.bf16.mxu0 %v2712_v47  ;;  %v2358_v55 = vld [vmem:[#allocation6 + $0x2a0] ss:$12 sps:$4 sm:$0xff]   ;;  %v2363_v58 = vld [vmem:[#allocation6 + $0x138] ss:$12 sps:$4 sm:$0xff]  }
  0x39   :  { %1414 = vmatpush1.bf16.msra.mxu1 %v2310_v19  ;;  %1374 = vmatprep.subr.bf16.mxu0 %v2311_v20  ;;  %v2359_v56 = vld [vmem:[#allocation6 + $0x13c] ss:$12 sps:$4 sm:$0xff]   ;;  %v2364_v59 = vld [vmem:[#allocation6 + $0x2b8] ss:$12 sps:$4 sm:$0xff]   ;;  %v2367_v61 = vld [vmem:[#allocation6 + $0x2d4] ss:$12 sps:$4 sm:$0xff]  }
  0x3a   :  { %1415 = vmatprep.subr.bf16.mxu1 %v2313_v21  ;;  %1437 = vmatprep.mubr.bf16.mxu1 %v2714_v51  ;;  %v2361_v57 = vld [vmem:[#allocation6 + $0x2bc] ss:$12 sps:$4 sm:$0xff]   ;;  %v2371_v0 = vld [vmem:[#allocation6 + $0x16c] ss:$12 sps:$4 sm:$0xff]   ;;  %v2383_v4 = vld [vmem:[#allocation6 + $0x304] ss:$12 sps:$4 sm:$0xff]  }
  0x3b   :  { %v2369_v62 = vld [vmem:[#allocation6 + $0x150] ss:$12 sps:$4 sm:$0xff]   ;;  %v2373_v1 = vld [vmem:[#allocation6 + $0x2ec] ss:$12 sps:$4 sm:$0xff]   ;;  %v2375_v2 = vld [vmem:[#allocation6 + $0x168] ss:$12 sps:$4 sm:$0xff]  }
  0x3c   :  { %1375 = vmatpush1.bf16.msra.mxu0 %v2315_v22  ;;  %v2370_v63 = vld [vmem:[#allocation6 + $0x2d0] ss:$12 sps:$4 sm:$0xff]   ;;  %v2376_v3 = vld [vmem:[#allocation6 + $0x2e8] ss:$12 sps:$4 sm:$0xff]   ;;  %v2381_v8 = vld [vmem:[#allocation6 + $0x300] ss:$12 sps:$4 sm:$0xff]  }
  0x3d   :  { %1416 = vmatpush1.bf16.msra.mxu1 %v2316_v23  ;;  %1376 = vmatprep.subr.bf16.mxu0 %v2317_v24  ;;  %v2386_v5 = vld [vmem:[#allocation6 + $0x484] ss:$12 sps:$4 sm:$0xff]   ;;  %v2384_v9 = vld [vmem:[#allocation6 + $0x480] ss:$12 sps:$4 sm:$0xff]   ;;  %v2389_v10 = vld [vmem:[#allocation6 + $0x31c] ss:$12 sps:$4 sm:$0xff]  }
  0x3e   :  { %1417 = vmatprep.subr.bf16.mxu1 %v2319_v25  ;;  %v2392_v11 = vld [vmem:[#allocation6 + $0x49c] ss:$12 sps:$4 sm:$0xff]   ;;  %v2387_v12 = vld [vmem:[#allocation6 + $0x318] ss:$12 sps:$4 sm:$0xff]   ;;  %v2395_v14 = vld [vmem:[#allocation6 + $0x334] ss:$12 sps:$4 sm:$0xff]  }
  0x3f   :  { %v2390_v13 = vld [vmem:[#allocation6 + $0x498] ss:$12 sps:$4 sm:$0xff]   ;;  %v2398_v15 = vld [vmem:[#allocation6 + $0x4b4] ss:$12 sps:$4 sm:$0xff]   ;;  %v2393_v16 = vld [vmem:[#allocation6 + $0x330] ss:$12 sps:$4 sm:$0xff]  }
  0x40   :  { %1377 = vmatpush1.bf16.msra.mxu0 %v2321_v26  ;;  %v2396_v17 = vld [vmem:[#allocation6 + $0x4b0] ss:$12 sps:$4 sm:$0xff]   ;;  %v2401_v18 = vld [vmem:[#allocation6 + $0x34c] ss:$12 sps:$4 sm:$0xff]   ;;  %v2399_v20 = vld [vmem:[#allocation6 + $0x348] ss:$12 sps:$4 sm:$0xff]  }
  0x41   :  { %1418 = vmatpush1.bf16.msra.mxu1 %v2322_v27  ;;  %1378 = vmatprep.subr.bf16.mxu0 %v2323_v28  ;;  %v2404_v19 = vld [vmem:[#allocation6 + $0x4cc] ss:$12 sps:$4 sm:$0xff]   ;;  %v2402_v21 = vld [vmem:[#allocation6 + $0x4c8] ss:$12 sps:$4 sm:$0xff]   ;;  %v2407_v22 = vld [vmem:[#allocation6 + $0x364] ss:$12 sps:$4 sm:$0xff]  }
  0x42   :  { %1419 = vmatprep.subr.bf16.mxu1 %v2325_v29  ;;  %v2410_v23 = vld [vmem:[#allocation6 + $0x4e4] ss:$12 sps:$4 sm:$0xff]   ;;  %v2405_v24 = vld [vmem:[#allocation6 + $0x360] ss:$12 sps:$4 sm:$0xff]   ;;  %v2413_v26 = vld [vmem:[#allocation6 + $0x37c] ss:$12 sps:$4 sm:$0xff]  }
  0x43   :  { %v2408_v25 = vld [vmem:[#allocation6 + $0x4e0] ss:$12 sps:$4 sm:$0xff]   ;;  %v2416_v27 = vld [vmem:[#allocation6 + $0x4fc] ss:$12 sps:$4 sm:$0xff]   ;;  %v2411_v28 = vld [vmem:[#allocation6 + $0x378] ss:$12 sps:$4 sm:$0xff]  }
  0x44   :  { %1379 = vmatpush1.bf16.msra.mxu0 %v2327_v30  ;;  %v2414_v29 = vld [vmem:[#allocation6 + $0x4f8] ss:$12 sps:$4 sm:$0xff]   ;;  %v2419_v30 = vld [vmem:[#allocation6 + $0x394] ss:$12 sps:$4 sm:$0xff]   ;;  %v2437_v46 = vld [vmem:[#allocation6 + $0x3dc] ss:$12 sps:$4 sm:$0xff]  }
  0x45   :  { %1420 = vmatpush1.bf16.msra.mxu1 %v2328_v31  ;;  %1380 = vmatprep.subr.bf16.mxu0 %v2329_v32  ;;  %v2422_v31 = vld [vmem:[#allocation6 + $0x514] ss:$12 sps:$4 sm:$0xff]   ;;  %v2417_v32 = vld [vmem:[#allocation6 + $0x390] ss:$12 sps:$4 sm:$0xff]   ;;  %vm1945_vm2 = vcmask 1042434   ;;  %vm1947_vm3 = vcmask 1043459  }
  0x46   :  { %1421 = vmatprep.subr.bf16.mxu1 %v2331_v33  ;;  %v2724_v33 = vld [vmem:[#allocation3 + $0x10] sm:$0xff]  ;;  %v2440_v48 = vld [vmem:[#allocation6 + $0x55c] ss:$12 sps:$4 sm:$0xff]   ;;  %vm1949_vm4 = vcmask 1044484   ;;  %vm1951_vm5 = vcmask 1045509   ;;  %vm1953_vm6 = vcmask 1046534  }
  0x47   :  { %vm1955_vm7 = vcmask 1047559  }
  0x48   :  { %1381 = vmatpush1.bf16.msra.mxu0 %v2333_v34  ;;  %v2726_v34 = vld [vmem:[#allocation3 + $0x18] sm:$0xff] }
  0x49   :  { %1422 = vmatpush1.bf16.msra.mxu1 %v2334_v35  ;;  %1382 = vmatprep.subr.bf16.mxu0 %v2335_v36  ;;  %v2420_v35 = vld [vmem:[#allocation6 + $0x510] ss:$12 sps:$4 sm:$0xff]   ;;  %v2730_v36 = vcombine.high %v2724_v33, %v2724_v33 }
  0x4a   :  { %1423 = vmatprep.subr.bf16.mxu1 %v2337_v37  ;;  %v2734_v37 = vcombine.high %v2726_v34, %v2726_v34 }
  0x4c   :  { %1383 = vmatpush1.bf16.msra.mxu0 %v2339_v38  ;;  %v2425_v38 = vld [vmem:[#allocation6 + $0x3ac] ss:$12 sps:$4 sm:$0xff]  }
  0x4d   :  { %1424 = vmatpush1.bf16.msra.mxu1 %v2340_v39  ;;  %1384 = vmatprep.subr.bf16.mxu0 %v2341_v40  ;;  %v2428_v39 = vld [vmem:[#allocation6 + $0x52c] ss:$12 sps:$4 sm:$0xff]   ;;  %v2423_v40 = vld [vmem:[#allocation6 + $0x3a8] ss:$12 sps:$4 sm:$0xff]  }
  0x4e   :  { %1425 = vmatprep.subr.bf16.mxu1 %v2343_v41  ;;  %v2426_v41 = vld [vmem:[#allocation6 + $0x528] ss:$12 sps:$4 sm:$0xff]  }
  0x50   :  { %1385 = vmatpush1.bf16.msra.mxu0 %v2345_v42  ;;  %v2431_v42 = vld [vmem:[#allocation6 + $0x3c4] ss:$12 sps:$4 sm:$0xff]  }
  0x51   :  { %1426 = vmatpush1.bf16.msra.mxu1 %v2346_v43  ;;  %1386 = vmatprep.subr.bf16.mxu0 %v2347_v44  ;;  %v2434_v43 = vld [vmem:[#allocation6 + $0x544] ss:$12 sps:$4 sm:$0xff]   ;;  %v2429_v44 = vld [vmem:[#allocation6 + $0x3c0] ss:$12 sps:$4 sm:$0xff]  }
  0x52   :  { %1427 = vmatprep.subr.bf16.mxu1 %v2349_v45  ;;  %v2432_v45 = vld [vmem:[#allocation6 + $0x540] ss:$12 sps:$4 sm:$0xff]  }
  0x54   :  { %1387 = vmatpush1.bf16.msra.mxu0 %v2351_v49  ;;  %v2435_v49 = vld [vmem:[#allocation6 + $0x3d8] ss:$12 sps:$4 sm:$0xff]  }
  0x55   :  { %1428 = vmatpush1.bf16.msra.mxu1 %v2352_v50  ;;  %1388 = vmatprep.subr.bf16.mxu0 %v2353_v52  ;;  %v2438_v50 = vld [vmem:[#allocation6 + $0x558] ss:$12 sps:$4 sm:$0xff]   ;;  %v2443_v52 = vld [vmem:[#allocation6 + $0x3f4] ss:$12 sps:$4 sm:$0xff]  }
  0x56   :  { %1429 = vmatprep.subr.bf16.mxu1 %v2355_v53  ;;  %v2446_v53 = vld [vmem:[#allocation6 + $0x574] ss:$12 sps:$4 sm:$0xff]  }
  0x58   :  { %1389 = vmatpush1.bf16.msra.mxu0 %v2357_v54  ;;  %v2441_v54 = vld [vmem:[#allocation6 + $0x3f0] ss:$12 sps:$4 sm:$0xff]  }
  0x59   :  { %1430 = vmatpush1.bf16.msra.mxu1 %v2358_v55  ;;  %1390 = vmatprep.subr.bf16.mxu0 %v2359_v56  ;;  %v2444_v55 = vld [vmem:[#allocation6 + $0x570] ss:$12 sps:$4 sm:$0xff]   ;;  %v2449_v56 = vld [vmem:[#allocation6 + $0x40c] ss:$12 sps:$4 sm:$0xff]  }
  0x5a   :  { %1431 = vmatprep.subr.bf16.mxu1 %v2361_v57  ;;  %v2452_v57 = vld [vmem:[#allocation6 + $0x58c] ss:$12 sps:$4 sm:$0xff]  }
  0x5c   :  { %1391 = vmatpush1.bf16.msra.mxu0 %v2363_v58  ;;  %v2447_v58 = vld [vmem:[#allocation6 + $0x408] ss:$12 sps:$4 sm:$0xff]  }
  0x5d   :  { %1432 = vmatpush1.bf16.msra.mxu1 %v2364_v59  ;;  %1392 = vmatprep.subr.bf16.mxu0 %v2365_v60  ;;  %v2450_v59 = vld [vmem:[#allocation6 + $0x588] ss:$12 sps:$4 sm:$0xff]   ;;  %v2455_v60 = vld [vmem:[#allocation6 + $0x424] ss:$12 sps:$4 sm:$0xff]  }
  0x5e   :  { %1433 = vmatprep.subr.bf16.mxu1 %v2367_v61  ;;  %v2458_v61 = vld [vmem:[#allocation6 + $0x5a4] ss:$12 sps:$4 sm:$0xff]  }
  0x60   :  { %1393 = vmatpush1.bf16.msra.mxu0 %v2369_v62  ;;  %v2453_v62 = vld [vmem:[#allocation6 + $0x420] ss:$12 sps:$4 sm:$0xff]  }
  0x61   :  { %1434 = vmatpush1.bf16.msra.mxu1 %v2370_v63  ;;  %1394 = vmatprep.subr.bf16.mxu0 %v2371_v0  ;;  %v2456_v63 = vld [vmem:[#allocation6 + $0x5a0] ss:$12 sps:$4 sm:$0xff]   ;;  %v2461_v0 = vld [vmem:[#allocation6 + $0x43c] ss:$12 sps:$4 sm:$0xff]  }
  0x62   :  { %1435 = vmatprep.subr.bf16.mxu1 %v2373_v1  ;;  %v2464_v1 = vld [vmem:[#allocation6 + $0x5bc] ss:$12 sps:$4 sm:$0xff]  }
  0x64   :  { %1395 = vmatpush1.bf16.msra.mxu0 %v2375_v2  ;;  %v2459_v2 = vld [vmem:[#allocation6 + $0x438] ss:$12 sps:$4 sm:$0xff]  }
  0x65   :  { %1436 = vmatpush1.bf16.msra.mxu1 %v2376_v3  ;;  %1446 = vmatprep.subr.bf16.mxu0 %v2383_v4  ;;  %v2462_v3 = vld [vmem:[#allocation6 + $0x5b8] ss:$12 sps:$4 sm:$0xff]   ;;  %v2467_v4 = vld [vmem:[#allocation6 + $0x454] ss:$12 sps:$4 sm:$0xff]  }
  0x66   :  { %1487 = vmatprep.subr.bf16.mxu1 %v2386_v5  ;;  %v2470_v5 = vld [vmem:[#allocation6 + $0x5d4] ss:$12 sps:$4 sm:$0xff]  }
  0x67   :  { %1397 = vmatmul.mubr.bf16.vlgmr.msra.gmra.mrb[0].mxu0 %v2718_v6 }
  0x68   :  { %1438 = vmatmul.mubr.bf16.vlgmr.msra.gmra.mrb[0].mxu1 %v2720_v7  ;;  %1447 = vmatpush1.bf16.msra.mxu0 %v2381_v8  ;;  %v2465_v8 = vld [vmem:[#allocation6 + $0x450] ss:$12 sps:$4 sm:$0xff]  }
  0x69   :  { %1488 = vmatpush1.bf16.msra.mxu1 %v2384_v9  ;;  %1448 = vmatprep.subr.bf16.mxu0 %v2389_v10  ;;  %v2468_v9 = vld [vmem:[#allocation6 + $0x5d0] ss:$12 sps:$4 sm:$0xff]   ;;  %v2473_v10 = vld [vmem:[#allocation6 + $0x46c] ss:$12 sps:$4 sm:$0xff]  }
  0x6a   :  { %1489 = vmatprep.subr.bf16.mxu1 %v2392_v11  ;;  %1478 = vmatprep.mubr.bf16.mxu0 %v2730_v36  ;;  %v2476_v11 = vld [vmem:[#allocation6 + $0x5ec] ss:$12 sps:$4 sm:$0xff]  }
  0x6b   :  { %1519 = vmatprep.mubr.bf16.mxu1 %v2734_v37 }
  0x6c   :  { %1449 = vmatpush1.bf16.msra.mxu0 %v2387_v12  ;;  %v2471_v12 = vld [vmem:[#allocation6 + $0x468] ss:$12 sps:$4 sm:$0xff]  }
  0x6d   :  { %1490 = vmatpush1.bf16.msra.mxu1 %v2390_v13  ;;  %1450 = vmatprep.subr.bf16.mxu0 %v2395_v14  ;;  %v2474_v13 = vld [vmem:[#allocation6 + $0x5e8] ss:$12 sps:$4 sm:$0xff]  }
  0x6e   :  { %1491 = vmatprep.subr.bf16.mxu1 %v2398_v15  ;;  %v2481_v14 = vld [vmem:[#allocation6 + $0xc8] ss:$12 sps:$4 sm:$0xff]  }
  0x6f   :  { %v2482_v15 = vld [vmem:[#allocation6 + $0x248] ss:$12 sps:$4 sm:$0xff]  }
  0x70   :  { %1451 = vmatpush1.bf16.msra.mxu0 %v2393_v16  ;;  %v2483_v16 = vld [vmem:[#allocation6 + $0x8] ss:$12 sps:$4 sm:$0xff]  }
  0x71   :  { %1492 = vmatpush1.bf16.msra.mxu1 %v2396_v17  ;;  %1452 = vmatprep.subr.bf16.mxu0 %v2401_v18  ;;  %v2740_v17 = vcombine.low %v2724_v33, %v2724_v33  ;;  %v2744_v18 = vcombine.low %v2726_v34, %v2726_v34  ;;  %v2498_v33 = vld [vmem:[#allocation6 + $0x2a8] ss:$12 sps:$4 sm:$0xff]  }
  0x72   :  { %1493 = vmatprep.subr.bf16.mxu1 %v2404_v19  ;;  %v2484_v19 = vld [vmem:[#allocation6 + $0x188] ss:$12 sps:$4 sm:$0xff]  }
  0x73   :  { %v2499_v34 = vld [vmem:[#allocation6 + $0x68] ss:$12 sps:$4 sm:$0xff]  }
  0x74   :  { %1453 = vmatpush1.bf16.msra.mxu0 %v2399_v20  ;;  %v2485_v20 = vld [vmem:[#allocation6 + $0xe0] ss:$12 sps:$4 sm:$0xff]  }
  0x75   :  { %1494 = vmatpush1.bf16.msra.mxu1 %v2402_v21  ;;  %1454 = vmatprep.subr.bf16.mxu0 %v2407_v22  ;;  %v2486_v21 = vld [vmem:[#allocation6 + $0x260] ss:$12 sps:$4 sm:$0xff]  }
  0x76   :  { %1495 = vmatprep.subr.bf16.mxu1 %v2410_v23  ;;  %v2487_v22 = vld [vmem:[#allocation6 + $0x20] ss:$12 sps:$4 sm:$0xff]  }
  0x77   :  { %v2488_v23 = vld [vmem:[#allocation6 + $0x1a0] ss:$12 sps:$4 sm:$0xff]  }
  0x78   :  { %1455 = vmatpush1.bf16.msra.mxu0 %v2405_v24  ;;  %v2489_v24 = vld [vmem:[#allocation6 + $0xf8] ss:$12 sps:$4 sm:$0xff]  }
  0x79   :  { %1496 = vmatpush1.bf16.msra.mxu1 %v2408_v25  ;;  %1456 = vmatprep.subr.bf16.mxu0 %v2413_v26  ;;  %v2490_v25 = vld [vmem:[#allocation6 + $0x278] ss:$12 sps:$4 sm:$0xff]  }
  0x7a   :  { %1497 = vmatprep.subr.bf16.mxu1 %v2416_v27  ;;  %v2491_v26 = vld [vmem:[#allocation6 + $0x38] ss:$12 sps:$4 sm:$0xff]  }
  0x7b   :  { %v2492_v27 = vld [vmem:[#allocation6 + $0x1b8] ss:$12 sps:$4 sm:$0xff]  }
  0x7c   :  { %1457 = vmatpush1.bf16.msra.mxu0 %v2411_v28  ;;  %v2493_v28 = vld [vmem:[#allocation6 + $0x110] ss:$12 sps:$4 sm:$0xff]  }
  0x7d   :  { %1498 = vmatpush1.bf16.msra.mxu1 %v2414_v29  ;;  %1458 = vmatprep.subr.bf16.mxu0 %v2419_v30  ;;  %v2494_v29 = vld [vmem:[#allocation6 + $0x290] ss:$12 sps:$4 sm:$0xff]  }
  0x7e   :  { %1499 = vmatprep.subr.bf16.mxu1 %v2422_v31  ;;  %v2495_v30 = vld [vmem:[#allocation6 + $0x50] ss:$12 sps:$4 sm:$0xff]  }
  0x7f   :  { %v2496_v31 = vld [vmem:[#allocation6 + $0x1d0] ss:$12 sps:$4 sm:$0xff]  }
  0x80   :  { %1459 = vmatpush1.bf16.msra.mxu0 %v2417_v32  ;;  %v2497_v32 = vld [vmem:[#allocation6 + $0x128] ss:$12 sps:$4 sm:$0xff]  }
  0x81   :  { %1500 = vmatpush1.bf16.msra.mxu1 %v2420_v35  ;;  %1460 = vmatprep.subr.bf16.mxu0 %v2425_v38  ;;  %v2500_v35 = vld [vmem:[#allocation6 + $0x1e8] ss:$12 sps:$4 sm:$0xff]   ;;  %v2503_v38 = vld [vmem:[#allocation6 + $0x80] ss:$12 sps:$4 sm:$0xff]  }
  0x82   :  { %1501 = vmatprep.subr.bf16.mxu1 %v2428_v39  ;;  %v2504_v39 = vld [vmem:[#allocation6 + $0x200] ss:$12 sps:$4 sm:$0xff]  }
  0x84   :  { %1461 = vmatpush1.bf16.msra.mxu0 %v2423_v40  ;;  %v2505_v40 = vld [vmem:[#allocation6 + $0x158] ss:$12 sps:$4 sm:$0xff]  }
  0x85   :  { %1502 = vmatpush1.bf16.msra.mxu1 %v2426_v41  ;;  %1462 = vmatprep.subr.bf16.mxu0 %v2431_v42  ;;  %v2506_v41 = vld [vmem:[#allocation6 + $0x2d8] ss:$12 sps:$4 sm:$0xff]  }
  0x86   :  { %1503 = vmatprep.subr.bf16.mxu1 %v2434_v43  ;;  %v2507_v42 = vld [vmem:[#allocation6 + $0x98] ss:$12 sps:$4 sm:$0xff]  }
  0x87   :  { %v2508_v43 = vld [vmem:[#allocation6 + $0x218] ss:$12 sps:$4 sm:$0xff]  }
  0x88   :  { %1463 = vmatpush1.bf16.msra.mxu0 %v2429_v44  ;;  %v2509_v44 = vld [vmem:[#allocation6 + $0x170] ss:$12 sps:$4 sm:$0xff]  }
  0x89   :  { %1504 = vmatpush1.bf16.msra.mxu1 %v2432_v45  ;;  %1464 = vmatprep.subr.bf16.mxu0 %v2437_v46  ;;  %v2510_v45 = vld [vmem:[#allocation6 + $0x2f0] ss:$12 sps:$4 sm:$0xff]  }
  0x8a   :  { %1505 = vmatprep.subr.bf16.mxu1 %v2440_v48  ;;  %v2511_v46 = vld [vmem:[#allocation6 + $0xb0] ss:$12 sps:$4 sm:$0xff]  }
  0x8b   :  { %v2512_v48 = vld [vmem:[#allocation6 + $0x230] ss:$12 sps:$4 sm:$0xff]  }
  0x8c   :  { %1465 = vmatpush1.bf16.msra.mxu0 %v2435_v49  ;;  %v2513_v49 = vld [vmem:[#allocation6 + $0x3c8] ss:$12 sps:$4 sm:$0xff]  }
  0x8d   :  { %1506 = vmatpush1.bf16.msra.mxu1 %v2438_v50  ;;  %1466 = vmatprep.subr.bf16.mxu0 %v2443_v52  ;;  %v2514_v50 = vld [vmem:[#allocation6 + $0x548] ss:$12 sps:$4 sm:$0xff]  }
  0x8e   :  { %1507 = vmatprep.subr.bf16.mxu1 %v2446_v53  ;;  %v2515_v52 = vld [vmem:[#allocation6 + $0x308] ss:$12 sps:$4 sm:$0xff]  }
  0x8f   :  { %v2516_v53 = vld [vmem:[#allocation6 + $0x488] ss:$12 sps:$4 sm:$0xff]  }
  0x90   :  { %1467 = vmatpush1.bf16.msra.mxu0 %v2441_v54  ;;  %v2517_v54 = vld [vmem:[#allocation6 + $0x3e0] ss:$12 sps:$4 sm:$0xff]  }
  0x91   :  { %1508 = vmatpush1.bf16.msra.mxu1 %v2444_v55  ;;  %1468 = vmatprep.subr.bf16.mxu0 %v2449_v56  ;;  %v2518_v55 = vld [vmem:[#allocation6 + $0x560] ss:$12 sps:$4 sm:$0xff]  }
  0x92   :  { %1509 = vmatprep.subr.bf16.mxu1 %v2452_v57  ;;  %v2519_v56 = vld [vmem:[#allocation6 + $0x320] ss:$12 sps:$4 sm:$0xff]  }
  0x93   :  { %v2520_v57 = vld [vmem:[#allocation6 + $0x4a0] ss:$12 sps:$4 sm:$0xff]  }
  0x94   :  { %1469 = vmatpush1.bf16.msra.mxu0 %v2447_v58  ;;  %v2521_v58 = vld [vmem:[#allocation6 + $0x3f8] ss:$12 sps:$4 sm:$0xff]  }
  0x95   :  { %1510 = vmatpush1.bf16.msra.mxu1 %v2450_v59  ;;  %1470 = vmatprep.subr.bf16.mxu0 %v2455_v60  ;;  %v2522_v59 = vld [vmem:[#allocation6 + $0x578] ss:$12 sps:$4 sm:$0xff]  }
  0x96   :  { %1511 = vmatprep.subr.bf16.mxu1 %v2458_v61  ;;  %v2523_v60 = vld [vmem:[#allocation6 + $0x338] ss:$12 sps:$4 sm:$0xff]  }
  0x97   :  { %v2524_v61 = vld [vmem:[#allocation6 + $0x4b8] ss:$12 sps:$4 sm:$0xff]  }
  0x98   :  { %1471 = vmatpush1.bf16.msra.mxu0 %v2453_v62  ;;  %v2527_v62 = vld [vmem:[#allocation6 + $0x350] ss:$12 sps:$4 sm:$0xff]  }
  0x99   :  { %1512 = vmatpush1.bf16.msra.mxu1 %v2456_v63  ;;  %1472 = vmatprep.subr.bf16.mxu0 %v2461_v0  ;;  %v2528_v63 = vld [vmem:[#allocation6 + $0x4d0] ss:$12 sps:$4 sm:$0xff]   ;;  %v2529_v0 = vld [vmem:[#allocation6 + $0x428] ss:$12 sps:$4 sm:$0xff]  }
  0x9a   :  { %1513 = vmatprep.subr.bf16.mxu1 %v2464_v1  ;;  %v2530_v1 = vld [vmem:[#allocation6 + $0x5a8] ss:$12 sps:$4 sm:$0xff]  }
  0x9c   :  { %1473 = vmatpush1.bf16.msra.mxu0 %v2459_v2  ;;  %v2533_v2 = vld [vmem:[#allocation6 + $0x440] ss:$12 sps:$4 sm:$0xff]  }
  0x9d   :  { %1514 = vmatpush1.bf16.msra.mxu1 %v2462_v3  ;;  %1474 = vmatprep.subr.bf16.mxu0 %v2467_v4  ;;  %v2534_v3 = vld [vmem:[#allocation6 + $0x5c0] ss:$12 sps:$4 sm:$0xff]  }
  0x9e   :  { %1515 = vmatprep.subr.bf16.mxu1 %v2470_v5  ;;  %v2535_v4 = vld [vmem:[#allocation6 + $0x380] ss:$12 sps:$4 sm:$0xff]  }
  0x9f   :  { %v2536_v5 = vld [vmem:[#allocation6 + $0x500] ss:$12 sps:$4 sm:$0xff]  }
  0xa0   :  { %1475 = vmatpush1.bf16.msra.mxu0 %v2465_v8  ;;  %v2537_v8 = vld [vmem:[#allocation6 + $0x458] ss:$12 sps:$4 sm:$0xff]  }
  0xa1   :  { %1516 = vmatpush1.bf16.msra.mxu1 %v2468_v9  ;;  %1476 = vmatprep.subr.bf16.mxu0 %v2473_v10  ;;  %v2538_v9 = vld [vmem:[#allocation6 + $0x5d8] ss:$12 sps:$4 sm:$0xff]  }
  0xa2   :  { %1517 = vmatprep.subr.bf16.mxu1 %v2476_v11  ;;  %v2539_v10 = vld [vmem:[#allocation6 + $0x398] ss:$12 sps:$4 sm:$0xff]  }
  0xa3   :  { %v2540_v11 = vld [vmem:[#allocation6 + $0x518] ss:$12 sps:$4 sm:$0xff]  }
  0xa4   :  { %1477 = vmatpush1.bf16.msra.mxu0 %v2471_v12  ;;  %v2541_v12 = vld [vmem:[#allocation6 + $0x470] ss:$12 sps:$4 sm:$0xff]  }
  0xa5   :  { %1518 = vmatpush1.bf16.msra.mxu1 %v2474_v13  ;;  %2185 = vmatprep.subr.bf16.mxu0 %v2481_v14  ;;  %v2542_v13 = vld [vmem:[#allocation6 + $0x5f0] ss:$12 sps:$4 sm:$0xff]  }
  0xa6   :  { %2207 = vmatprep.subr.bf16.mxu1 %v2482_v15  ;;  %v2543_v14 = vld [vmem:[#allocation6 + $0x3b0] ss:$12 sps:$4 sm:$0xff]  }
  0xa7   :  { %1479 = vmatmul.mubr.bf16.vlgmr.msra.gmra.mrb[4].mxu0 %v2740_v17  ;;  %v2544_v15 = vld [vmem:[#allocation6 + $0x530] ss:$12 sps:$4 sm:$0xff]  }
  0xa8   :  { %1520 = vmatmul.mubr.bf16.vlgmr.msra.gmra.mrb[4].mxu1 %v2744_v18  ;;  %2186 = vmatpush3.bf16.msra.mxu0 %v2483_v16 }
  0xa9   :  { %2208 = vmatpush3.bf16.msra.mxu1 %v2484_v19  ;;  %2187 = vmatprep.subr.bf16.mxu0 %v2485_v20 }
  0xaa   :  { %2209 = vmatprep.subr.bf16.mxu1 %v2486_v21  ;;  %1560 = vmatprep.mubr.bf16.mxu0 %v2712_v47  ;;  %v2501_v47 = vld [vmem:[#allocation6 + $0x140] ss:$12 sps:$4 sm:$0xff]  }
  0xab   :  { %1600 = vmatprep.mubr.bf16.mxu1 %v2714_v51  ;;  %v2502_v51 = vld [vmem:[#allocation6 + $0x2c0] ss:$12 sps:$4 sm:$0xff]  }
  0xac   :  { %2188 = vmatpush3.bf16.msra.mxu0 %v2487_v22 }
  0xad   :  { %2210 = vmatpush3.bf16.msra.mxu1 %v2488_v23  ;;  %2189 = vmatprep.subr.bf16.mxu0 %v2489_v24 }
  0xae   :  { %2211 = vmatprep.subr.bf16.mxu1 %v2490_v25 }
  0xb0   :  { %2190 = vmatpush3.bf16.msra.mxu0 %v2491_v26 }
  0xb1   :  { %2212 = vmatpush3.bf16.msra.mxu1 %v2492_v27  ;;  %2191 = vmatprep.subr.bf16.mxu0 %v2493_v28 }
  0xb2   :  { %2213 = vmatprep.subr.bf16.mxu1 %v2494_v29 }
  0xb4   :  { %2192 = vmatpush3.bf16.msra.mxu0 %v2495_v30 }
  0xb5   :  { %2214 = vmatpush3.bf16.msra.mxu1 %v2496_v31  ;;  %2193 = vmatprep.subr.bf16.mxu0 %v2497_v32 }
  0xb6   :  { %2215 = vmatprep.subr.bf16.mxu1 %v2498_v33 }
  0xb8   :  { %2194 = vmatpush3.bf16.msra.mxu0 %v2499_v34 }
  0xb9   :  { %2216 = vmatpush3.bf16.msra.mxu1 %v2500_v35  ;;  %2195 = vmatprep.subr.bf16.mxu0 %v2501_v47 }
  0xba   :  { %2217 = vmatprep.subr.bf16.mxu1 %v2502_v51 }
  0xbc   :  { %2196 = vmatpush3.bf16.msra.mxu0 %v2503_v38 }
  0xbd   :  { %2218 = vmatpush3.bf16.msra.mxu1 %v2504_v39  ;;  %2197 = vmatprep.subr.bf16.mxu0 %v2505_v40 }
  0xbe   :  { %2219 = vmatprep.subr.bf16.mxu1 %v2506_v41 }
  0xc0   :  { %2198 = vmatpush3.bf16.msra.mxu0 %v2507_v42 }
  0xc1   :  { %2220 = vmatpush3.bf16.msra.mxu1 %v2508_v43  ;;  %2199 = vmatprep.subr.bf16.mxu0 %v2509_v44 }
  0xc2   :  { %2221 = vmatprep.subr.bf16.mxu1 %v2510_v45 }
  0xc4   :  { %2200 = vmatpush3.bf16.msra.mxu0 %v2511_v46 }
  0xc5   :  { %2222 = vmatpush3.bf16.msra.mxu1 %v2512_v48  ;;  %2229 = vmatprep.subr.bf16.mxu0 %v2513_v49 }
  0xc6   :  { %2251 = vmatprep.subr.bf16.mxu1 %v2514_v50  ;;  %v1702_v50 = vlaneseq }
  0xc7   :  { %1561 = vmatmul.mubr.bf16.vlgmr.msra.gmra.mrb[8].mxu0 %v2718_v6  ;;  %v2525_v6 = vld [vmem:[#allocation6 + $0x410] ss:$12 sps:$4 sm:$0xff]  }
  0xc8   :  { %1601 = vmatmul.mubr.bf16.vlgmr.msra.gmra.mrb[8].mxu1 %v2720_v7  ;;  %2230 = vmatpush3.bf16.msra.mxu0 %v2515_v52  ;;  %v2526_v7 = vld [vmem:[#allocation6 + $0x590] ss:$12 sps:$4 sm:$0xff]   ;;  %v1703_v52 = vshrl.u32 %v1702_v50, 7 }
  0xc9   :  { %2252 = vmatpush3.bf16.msra.mxu1 %v2516_v53  ;;  %2231 = vmatprep.subr.bf16.mxu0 %v2517_v54  ;;  %v1700_v54 = vld [vmem:[%s2805_s2] sm:$0x7]  ;;  %s2660_s2 = smov [#allocation8]  }
  0xca   :  { %2253 = vmatprep.subr.bf16.mxu1 %v2518_v55  ;;  %1640 = vmatprep.mubr.bf16.mxu0 %v2730_v36  ;;  %v2531_v36 = vld [vmem:[#allocation6 + $0x368] ss:$12 sps:$4 sm:$0xff]   ;;  %v1708_v53 = vsub.s32 1, %v1703_v52  ;;  %v1704_v55 = vsub.s32 0, %v1703_v52  ;;  %s1975_s11 = sshll.u32 %s2660_s2, 4  ;;  %s1976_s11 = int_to_ptr.vmem [resolvable:$true] %s1975_s11 }
  0xcb   :  { %1680 = vmatprep.mubr.bf16.mxu1 %v2734_v37  ;;  %v2532_v37 = vld [vmem:[#allocation6 + $0x4e8] ss:$12 sps:$4 sm:$0xff]   ;;  %s2625_s12 = scalar_lea.vmem %s1976_s11, 128  ;;  %p2630_p3 = scmp.lt.s32.totalorder %s1976_s11, %s1976_s11 }
  0xcc   :  { %2232 = vmatpush3.bf16.msra.mxu0 %v2519_v56  ;;  %v1709_v56 = vrot.slane %v1700_v54, %v1708_v53  ;;  %p2626_p2 = scmp.ne.s32.totalorder %s1976_s11, %s2625_s12  ;;  %p2631_p4 = scmp.lt.s32.totalorder %s2625_s12, %s2625_s12 }
  0xcd   :  { %2254 = vmatpush3.bf16.msra.mxu1 %v2520_v57  ;;  %2233 = vmatprep.subr.bf16.mxu0 %v2521_v58  ;;  %v2657_v57 = vmov 1983009808  }
  0xce   :  { %2255 = vmatprep.subr.bf16.mxu1 %v2522_v59  ;;  %v1723_v58 = vunpack.c.l.s4 %v2657_v57  ;;  %p2632_p5 = por %p2631_p4, %p2630_p3 }
  0xd0   :  { %2234 = vmatpush3.bf16.msra.mxu0 %v2523_v60  ;;  %p2633_p6 = pnand %p2632_p5, %p2626_p2 }
  0xd1   :  { %2256 = vmatpush3.bf16.msra.mxu1 %v2524_v61  ;;  %2235 = vmatprep.subr.bf16.mxu0 %v2525_v6  ;;  %v1712_v61 = vsub.s32 2, %v1703_v52 }
  0xd2   :  { %2257 = vmatprep.subr.bf16.mxu1 %v2526_v7 }
  0xd4   :  { %2236 = vmatpush3.bf16.msra.mxu0 %v2527_v62 }
  0xd5   :  { %2258 = vmatpush3.bf16.msra.mxu1 %v2528_v63  ;;  %2237 = vmatprep.subr.bf16.mxu0 %v2529_v0 }
  0xd6   :  { %2259 = vmatprep.subr.bf16.mxu1 %v2530_v1 }
  0xd8   :  { %2238 = vmatpush3.bf16.msra.mxu0 %v2531_v36  ;;  %v1705_v36 = vrot.slane %v1700_v54, %v1704_v55 }
  0xd9   :  { %2260 = vmatpush3.bf16.msra.mxu1 %v2532_v37  ;;  %2239 = vmatprep.subr.bf16.mxu0 %v2533_v2 }
  0xda   :  { %2261 = vmatprep.subr.bf16.mxu1 %v2534_v3  ;;  %v2658_v3 = vmov 1934713408  }
  0xdc   :  { %2240 = vmatpush3.bf16.msra.mxu0 %v2535_v4  ;;  %v1754_v4 = vunpack.c.l.s4 %v2658_v3 }
  0xdd   :  { %2262 = vmatpush3.bf16.msra.mxu1 %v2536_v5  ;;  %2241 = vmatprep.subr.bf16.mxu0 %v2537_v8  ;;  %v1724_v8 = vunpack.c.0.s8 %v1723_v58 }
  0xde   :  { %2263 = vmatprep.subr.bf16.mxu1 %v2538_v9 }
  0xe0   :  { %2242 = vmatpush3.bf16.msra.mxu0 %v2539_v10  ;;  %v1713_v10 = vrot.slane %v1700_v54, %v1712_v61 }
  0xe1   :  { %2264 = vmatpush3.bf16.msra.mxu1 %v2540_v11  ;;  %2243 = vmatprep.subr.bf16.mxu0 %v2541_v12  ;;  %v1755_v12 = vunpack.c.0.s8 %v1754_v4 }
  0xe2   :  { %2265 = vmatprep.subr.bf16.mxu1 %v2542_v13 }
  0xe4   :  { %2244 = vmatpush3.bf16.msra.mxu0 %v2543_v14  ;;  %v1727_v14 = vsub.s32 %v1724_v8, %v1703_v52 }
  0xe5   :  { %2266 = vmatpush3.bf16.msra.mxu1 %v2544_v15  ;;  %v2659_v15 = vmov 0.0  }
  0xe7   :  { %1641 = vmatmul.mubr.bf16.vlgmr.msra.gmra.mrb[12].mxu0 %v2740_v17 }
  0xe8   :  { %1681 = vmatmul.mubr.bf16.vlgmr.msra.gmra.mrb[12].mxu1 %v2744_v18 }
 0x13a   :  { %v1398_v16 = vpop.f32.mrb[0].mxu0 }
 0x13b   :  { %v1439_v19 = vpop.f32.mrb[0].mxu1  ;;  %v1400_v21 = vpop.f32.mrb[1].mxu0 }
 0x13c   :  { %v1440_v20 = vadd.f32 %v1439_v19, %v1398_v16  ;;  %v1441_v22 = vpop.f32.mrb[1].mxu1  ;;  %v1402_v24 = vpop.f32.mrb[2].mxu0 }
 0x13d   :  { %v1442_v23 = vadd.f32 %v1441_v22, %v1400_v21  ;;  %v1443_v25 = vpop.f32.mrb[2].mxu1  ;;  %v1403_v26 = vpop.f32.mrb[3].mxu0  ;;  %v1758_v22 = vsub.s32 %v1755_v12, %v1703_v52 }
 0x13e   :  { %v1444_v27 = vpop.f32.mrb[3].mxu1 }
 0x17a   :  { %v1480_v28 = vpop.f32.mrb[4].mxu0 }
 0x17b   :  { %v1521_v29 = vpop.f32.mrb[4].mxu1  ;;  %v1481_v30 = vadd.f32 %v1480_v28, %v1440_v20  ;;  %v1482_v31 = vpop.f32.mrb[5].mxu0 }
 0x17c   :  { %v1523_v32 = vpop.f32.mrb[5].mxu1  ;;  %v1483_v33 = vadd.f32 %v1482_v31, %v1442_v23  ;;  %v1484_v34 = vpop.f32.mrb[6].mxu0 }
 0x17d   :  { %v1525_v17 = vpop.f32.mrb[6].mxu1  ;;  %v1522_v35 = vadd.f32 %v1521_v29, %v1481_v30  ;;  %v1485_v18 = vpop.f32.mrb[7].mxu0 }
 0x17e   :  { %v1526_v47 = vpop.f32.mrb[7].mxu1  ;;  %v1524_v51 = vadd.f32 %v1523_v32, %v1483_v33 }
 0x17f   :  { %v1717_v13 = vadd.f32 %v1705_v36, %v1522_v35 }
 0x180   :  { %v1718_v5 = vadd.f32 %v1709_v56, %v1524_v51 }
 0x182   :  { %v1736_v16 = vcombine.high %v1718_v5, %v2659_v15  ;;  %v1743_v23 = vrot.slane %v1718_v5, %v1727_v14 }
 0x184   :  { %v1750_v24 = vrot.slane %v1736_v16, %v1727_v14 }
 0x19a   :  { %v2201_v38 = vpop.f32.mrb[8].mxu0 }
 0x19b   :  { %v2223_v39 = vpop.f32.mrb[8].mxu1  ;;  %v2202_v40 = vpop.f32.mrb[9].mxu0 }
 0x19c   :  { %v2224_v41 = vpop.f32.mrb[9].mxu1  ;;  %v2203_v42 = vadd.f32 %v2202_v40, %v2201_v38  ;;  %v2204_v44 = vpop.f32.mrb[10].mxu0 }
 0x19d   :  { %v2225_v43 = vadd.f32 %v2224_v41, %v2223_v39  ;;  %v2226_v45 = vpop.f32.mrb[10].mxu1  ;;  %v2205_v46 = vpop.f32.mrb[11].mxu0 }
 0x19e   :  { %v2227_v48 = vpop.f32.mrb[11].mxu1 }
 0x19f   :  { %v1603_v49 = vadd.f32 %v2225_v43, %v2203_v42 }
 0x1ba   :  { %v2245_v59 = vpop.f32.mrb[12].mxu0 }
 0x1bb   :  { %v2267_v60 = vpop.f32.mrb[12].mxu1  ;;  %v2246_v6 = vpop.f32.mrb[13].mxu0 }
 0x1bc   :  { %v2268_v7 = vpop.f32.mrb[13].mxu1  ;;  %v2247_v62 = vadd.f32 %v2246_v6, %v2245_v59  ;;  %v2248_v0 = vpop.f32.mrb[14].mxu0 }
 0x1bd   :  { %v2269_v63 = vadd.f32 %v2268_v7, %v2267_v60  ;;  %v2270_v1 = vpop.f32.mrb[14].mxu1  ;;  %v2249_v37 = vpop.f32.mrb[15].mxu0 }
 0x1be   :  { %v2271_v2 = vpop.f32.mrb[15].mxu1  ;;  %v1643_v9 = vadd.f32 %v2247_v62, %v1603_v49 }
 0x1c0   :  { %v1683_v11 = vadd.f32 %v2269_v63, %v1643_v9 }
 0x1c2   :  { %v1719_v19 = vadd.f32 %v1713_v10, %v1683_v11 }
 0x1c4   :  { %v1720_v20 = vcombine.low %v1717_v13, %v1719_v19  ;;  %v1721_v21 = vcombine.high %v1717_v13, %v1719_v19 }
 0x1c6   :  { %v1735_v25 = vrot.slane %v1721_v21, %v1727_v14  ;;  %v1728_v26 = vrot.slane %v1720_v20, %v1727_v14 }
 0x1c8   :  { %v1752_v27 = vcombine.high %v1728_v26, %v1743_v23  ;;  %v1751_v28 = vcombine.low %v1728_v26, %v1743_v23  ;;  %v1767_v29 = vcombine.low %v1735_v25, %v1750_v24  ;;  %v1768_v30 = vcombine.high %v1735_v25, %v1750_v24 }
 0x1ca   :  { %v1766_v31 = vrot.slane %v1752_v27, %v1758_v22  ;;  %v1759_v32 = vrot.slane %v1751_v28, %v1758_v22  ;;  %v1775_v33 = vrot.slane %v1767_v29, %v1758_v22  ;;  %v1782_v39 = vrot.slane %v1768_v30, %v1758_v22 }
 0x1cc   :  { %v1794_v34 = vsel %vm1787_vm0, %v1766_v31, -inf  ;;  %v1788_v17 = vsel %vm1787_vm0, %v1759_v32, -inf  ;;  %v1784_v35 = vcombine.high %v1766_v31, %v2659_v15  ;;  %v1783_v18 = vcombine.high %v1759_v32, %v2659_v15 }
 0x1cd   :  { %1795 = vmax.xlane.f32.xlu1 %v1794_v34  ;;  %1789 = vmax.xlane.f32.xlu0 %v1788_v17  ;;  %v1785_v38 = vcombine.high %v1775_v33, %v2659_v15  ;;  %v1800_v41 = vsel %vm1787_vm0, %v1775_v33, -inf  ;;  %v1786_v42 = vcombine.high %v1782_v39, %v2659_v15  ;;  %v1806_v44 = vsel %vm1787_vm0, %v1782_v39, -inf }
 0x1ce   :  { %v1797_v47 = vsel %vm1787_vm0, %v1784_v35, -inf  ;;  %v1791_v51 = vsel %vm1787_vm0, %v1783_v18, -inf }
 0x1cf   :  { %v1803_v40 = vsel %vm1787_vm0, %v1785_v38, -inf  ;;  %v1809_v43 = vsel %vm1787_vm0, %v1786_v42, -inf }
 0x1d1   :  { %1798 = vmax.xlane.f32.xlu1 %v1797_v47  ;;  %1792 = vmax.xlane.f32.xlu0 %v1791_v51 }
 0x1d5   :  { %1804 = vmax.xlane.f32.xlu1 %v1803_v40  ;;  %1801 = vmax.xlane.f32.xlu0 %v1800_v41 }
 0x1d9   :  { %1810 = vmax.xlane.f32.xlu1 %v1809_v43  ;;  %1807 = vmax.xlane.f32.xlu0 %v1806_v44 }
 0x25a   :  { %v1796_v45 = vpop.xlane.xlu1 %1795  ;;  %v1790_v46 = vpop.xlane.xlu0 %1789 }
 0x25b   :  { %v1814_v48 = vsub.f32 %v1766_v31, %v1796_v45  ;;  %v1812_v49 = vsub.f32 %v1759_v32, %v1790_v46 }
 0x25d   :  { %v1820_v52 = vmul.f32 1.442695, %v1812_v49  ;;  %v1824_v53 = vmul.f32 1.442695, %v1814_v48 }
 0x25e   :  { %v1799_v54 = vpop.xlane.xlu1 %1798  ;;  %v1793_v55 = vpop.xlane.xlu0 %1792 }
 0x25f   :  { %v1815_v56 = vsub.f32 %v1784_v35, %v1799_v54  ;;  %v1813_v57 = vsub.f32 %v1783_v18, %v1793_v55  ;;  %2545 = vpow2.f32 %v1820_v52 }
 0x260   :  { %2547 = vpow2.f32 %v1824_v53 }
 0x261   :  { %v1822_v58 = vmul.f32 1.442695, %v1813_v57  ;;  %v1826_v59 = vmul.f32 1.442695, %v1815_v56 }
 0x262   :  { %v1805_v60 = vpop.xlane.xlu1 %1804  ;;  %v1802_v61 = vpop.xlane.xlu0 %1801 }
 0x263   :  { %v1817_v6 = vsub.f32 %v1785_v38, %v1805_v60  ;;  %v1816_v7 = vsub.f32 %v1775_v33, %v1802_v61  ;;  %2549 = vpow2.f32 %v1822_v58 }
 0x264   :  { %2551 = vpow2.f32 %v1826_v59 }
 0x265   :  { %v1828_v62 = vmul.f32 1.442695, %v1816_v7  ;;  %v1830_v63 = vmul.f32 1.442695, %v1817_v6 }
 0x266   :  { %v1811_v0 = vpop.xlane.xlu1 %1810  ;;  %v1808_v1 = vpop.xlane.xlu0 %1807 }
 0x267   :  { %v1819_v36 = vsub.f32 %v1786_v42, %v1811_v0  ;;  %v1818_v37 = vsub.f32 %v1782_v39, %v1808_v1  ;;  %2553 = vpow2.f32 %v1828_v62 }
 0x268   :  { %2555 = vpow2.f32 %v1830_v63 }
 0x269   :  { %v1832_v2 = vmul.f32 1.442695, %v1818_v37  ;;  %v2546_v3 = vpop.eup %2545  ;;  %v1834_v4 = vmul.f32 1.442695, %v1819_v36 }
 0x26a   :  { %v1836_v5 = vsel %vm1787_vm0, %v2546_v3, 0.0  ;;  %v2548_v8 = vpop.eup %2547 }
 0x26b   :  { %2557 = vpow2.f32 %v1832_v2  ;;  %1837 = vadd.xlane.f32.xlu0 %v1836_v5  ;;  %v1842_v10 = vsel %vm1787_vm0, %v2548_v8, 0.0 }
 0x26c   :  { %2559 = vpow2.f32 %v1834_v4 }
 0x26d   :  { %v2550_v9 = vpop.eup %2549 }
 0x26e   :  { %v1839_v11 = vsel %vm1787_vm0, %v2550_v9, 0.0  ;;  %v2552_v12 = vpop.eup %2551 }
 0x26f   :  { %1843 = vadd.xlane.f32.xlu0 %v1842_v10  ;;  %1840 = vadd.xlane.f32.xlu1 %v1839_v11  ;;  %v1845_v14 = vsel %vm1787_vm0, %v2552_v12, 0.0 }
 0x271   :  { %v2554_v13 = vpop.eup %2553 }
 0x272   :  { %v1848_v15 = vsel %vm1787_vm0, %v2554_v13, 0.0  ;;  %v2556_v16 = vpop.eup %2555 }
 0x273   :  { %1846 = vadd.xlane.f32.xlu1 %v1845_v14  ;;  %1849 = vadd.xlane.f32.xlu0 %v1848_v15  ;;  %v1851_v20 = vsel %vm1787_vm0, %v2556_v16, 0.0 }
 0x275   :  { %v2558_v19 = vpop.eup %2557 }
 0x276   :  { %v1854_v21 = vsel %vm1787_vm0, %v2558_v19, 0.0  ;;  %v2775_v22 = vpop.eup %2559 }
 0x277   :  { %1852 = vadd.xlane.f32.xlu1 %v1851_v20  ;;  %1855 = vadd.xlane.f32.xlu0 %v1854_v21  ;;  %v1857_v23 = vsel %vm1787_vm0, %v2775_v22, 0.0 }
 0x27b   :  { %1858 = vadd.xlane.f32.xlu1 %v1857_v23 }
 0x2f8   :  { %v1838_v24 = vpop.xlane.xlu0 %1837 }
 0x2f9   :  { %2561 = vrcp.f32 %v1838_v24 }
 0x2fc   :  { %v1841_v25 = vpop.xlane.xlu1 %1840  ;;  %v1844_v26 = vpop.xlane.xlu0 %1843 }
 0x2fd   :  { %2563 = vrcp.f32 %v1841_v25 }
 0x2fe   :  { %2565 = vrcp.f32 %v1844_v26 }
 0x300   :  { %v1847_v27 = vpop.xlane.xlu1 %1846  ;;  %v1850_v28 = vpop.xlane.xlu0 %1849 }
 0x301   :  { %2567 = vrcp.f32 %v1847_v27 }
 0x302   :  { %2569 = vrcp.f32 %v1850_v28 }
 0x303   :  { %v2562_v29 = vpop.eup %2561 }
 0x304   :  { %v1868_v30 = vmul.f32 %v2562_v29, %v2546_v3  ;;  %v1853_v31 = vpop.xlane.xlu1 %1852  ;;  %v1856_v32 = vpop.xlane.xlu0 %1855 }
 0x305   :  { %2571 = vrcp.f32 %v1853_v31 }
 0x306   :  { %v1876_v33 = vsel %vm1787_vm0, %v1868_v30, 0.0  ;;  %2573 = vrcp.f32 %v1856_v32 }
 0x307   :  { %v2564_v34 = vpop.eup %2563  ;;  %v1877_v17 = vrot.slane %v1876_v33, 4 }
 0x308   :  { %v2566_v35 = vpop.eup %2565  ;;  %v1869_v18 = vmul.f32 %v2564_v34, %v2550_v9  ;;  %v1859_v47 = vpop.xlane.xlu1 %1858 }
 0x309   :  { %v1878_v51 = vadd.f32 %v1877_v17, %v1876_v33  ;;  %v1870_v38 = vmul.f32 %v2566_v35, %v2548_v8  ;;  %2575 = vrcp.f32 %v1859_v47 }
 0x30a   :  { %v1883_v39 = vsel %vm1787_vm0, %v1869_v18, 0.0 }
 0x30b   :  { %v2568_v40 = vpop.eup %2567  ;;  %v1879_v41 = vrot.slane %v1878_v51, 2  ;;  %v1884_v42 = vrot.slane %v1883_v39, 4  ;;  %v1890_v43 = vsel %vm1787_vm0, %v1870_v38, 0.0 }
 0x30c   :  { %v2570_v44 = vpop.eup %2569  ;;  %v1891_v45 = vrot.slane %v1890_v43, 4  ;;  %v1871_v46 = vmul.f32 %v2568_v40, %v2552_v12 }
 0x30d   :  { %v1880_v48 = vadd.f32 %v1879_v41, %v1878_v51  ;;  %v1885_v49 = vadd.f32 %v1884_v42, %v1883_v39  ;;  %v1872_v52 = vmul.f32 %v2570_v44, %v2554_v13  ;;  %v1933_v39 = vand.u32 127, %v1702_v50 }
 0x30e   :  { %v1892_v53 = vadd.f32 %v1891_v45, %v1890_v43  ;;  %v1897_v54 = vsel %vm1787_vm0, %v1871_v46, 0.0 }
 0x30f   :  { %v2572_v55 = vpop.eup %2571  ;;  %v1886_v56 = vrot.slane %v1885_v49, 2  ;;  %v1898_v57 = vrot.slane %v1897_v54, 4  ;;  %v1904_v58 = vsel %vm1787_vm0, %v1872_v52, 0.0  ;;  %v1881_v7 = vrot.slane %v1880_v48, 1 }
 0x310   :  { %v2574_v59 = vpop.eup %2573  ;;  %v1893_v60 = vrot.slane %v1892_v53, 2  ;;  %v1905_v61 = vrot.slane %v1904_v58, 4  ;;  %v1873_v6 = vmul.f32 %v2572_v55, %v2556_v16  ;;  %vm1934_vm8 = vcmp.lt.s32.totalorder %v1933_v39, 10 }
 0x311   :  { %v1887_v62 = vadd.f32 %v1886_v56, %v1885_v49  ;;  %v1899_v63 = vadd.f32 %v1898_v57, %v1897_v54  ;;  %v1874_v0 = vmul.f32 %v2574_v59, %v2558_v19  ;;  %v1882_v13 = vadd.f32 %v1881_v7, %v1880_v48 }
 0x312   :  { %v1894_v1 = vadd.f32 %v1893_v60, %v1892_v53  ;;  %v1906_v36 = vadd.f32 %v1905_v61, %v1904_v58  ;;  %v1911_v37 = vsel %vm1787_vm0, %v1873_v6, 0.0 }
 0x313   :  { %v2576_v2 = vpop.eup %2575  ;;  %v1888_v3 = vrot.slane %v1887_v62, 1  ;;  %v1900_v4 = vrot.slane %v1899_v63, 2  ;;  %v1912_v5 = vrot.slane %v1911_v37, 4  ;;  %v1918_v8 = vsel %vm1787_vm0, %v1874_v0, 0.0 }
 0x314   :  { %v1895_v9 = vrot.slane %v1894_v1, 1  ;;  %v1907_v10 = vrot.slane %v1906_v36, 2  ;;  %v1875_v11 = vmul.f32 %v2576_v2, %v2775_v22  ;;  %v1919_v12 = vrot.slane %v1918_v8, 4 }
 0x315   :  { %v1889_v14 = vadd.f32 %v1888_v3, %v1887_v62  ;;  %v1901_v15 = vadd.f32 %v1900_v4, %v1899_v63  ;;  %v1913_v16 = vadd.f32 %v1912_v5, %v1911_v37 }
 0x316   :  { %v1896_v19 = vadd.f32 %v1895_v9, %v1894_v1  ;;  %v1908_v20 = vadd.f32 %v1907_v10, %v1906_v36  ;;  %v1920_v21 = vadd.f32 %v1919_v12, %v1918_v8  ;;  %v1925_v23 = vsel %vm1787_vm0, %v1875_v11, 0.0 }
 0x317   :  { %v1902_v24 = vrot.slane %v1901_v15, 1  ;;  %v1914_v25 = vrot.slane %v1913_v16, 2  ;;  %v1926_v26 = vrot.slane %v1925_v23, 4  ;;  %v1944_v27 = vsel %vm1943_vm1, %v1889_v14, %v1882_v13 }
 0x318   :  { %v1909_v28 = vrot.slane %v1908_v20, 1  ;;  %v1921_v29 = vrot.slane %v1920_v21, 2  ;;  %v1946_v34 = vsel %vm1945_vm2, %v1896_v19, %v1944_v27 }
 0x319   :  { %v1903_v30 = vadd.f32 %v1902_v24, %v1901_v15  ;;  %v1915_v22 = vadd.f32 %v1914_v25, %v1913_v16  ;;  %v1927_v31 = vadd.f32 %v1926_v26, %v1925_v23 }
 0x31a   :  { %v1910_v32 = vadd.f32 %v1909_v28, %v1908_v20  ;;  %v1922_v33 = vadd.f32 %v1921_v29, %v1920_v21 }
 0x31b   :  { %v1916_v17 = vrot.slane %v1915_v22, 1  ;;  %v1928_v35 = vrot.slane %v1927_v31, 2  ;;  %v1948_v18 = vsel %vm1947_vm3, %v1903_v30, %v1946_v34 }
 0x31c   :  { %v1923_v47 = vrot.slane %v1922_v33, 1  ;;  %v1950_v41 = vsel %vm1949_vm4, %v1910_v32, %v1948_v18 }
 0x31d   :  { %v1917_v51 = vadd.f32 %v1916_v17, %v1915_v22  ;;  %v1929_v38 = vadd.f32 %v1928_v35, %v1927_v31 }
 0x31e   :  { %v1924_v40 = vadd.f32 %v1923_v47, %v1922_v33 }
 0x31f   :  { %v1930_v42 = vrot.slane %v1929_v38, 1  ;;  %v1952_v43 = vsel %vm1951_vm5, %v1917_v51, %v1950_v41 }
 0x320   :  { %v1954_v45 = vsel %vm1953_vm6, %v1924_v40, %v1952_v43 }
 0x321   :  { %v1931_v44 = vadd.f32 %v1930_v42, %v1929_v38 }
 0x323   :  { %v1956_v46 = vsel %vm1955_vm7, %v1931_v44, %v1954_v45 }
 0x324   :  { %v1958_v48 = vsel %vm1934_vm8, %v1956_v46, -1e+30 }
 0x325   :  { %1959 = vmax.xlane.f32.xlu0 %v1958_v48 }
 0x3b2   :  { %v1960_v49 = vpop.xlane.xlu0 %1959 }
 0x3b3   :  { %v1961_v52 = vsub.f32 %v1958_v48, %v1960_v49 }
 0x3b5   :  { %v1962_v53 = vmul.f32 1.442695, %v1961_v52 }
 0x3b7   :  { %2577 = vpow2.f32 %v1962_v53 }
 0x3c1   :  { %v2578_v54 = vpop.eup %2577 }
 0x3c2   :  { %1964 = vadd.xlane.f32.xlu1 %v2578_v54 }
 0x44f   :  { %v1965_v55 = vpop.xlane.xlu1 %1964 }
 0x450   :  { %2579 = vrcp.f32 %v1965_v55 }
 0x45a   :  { %v2580_v50 = vpop.eup %2579 }
 0x45b   :  { %v1967_v56 = vmul.f32 %v2580_v50, %v2578_v54 }
 0x45d   :  { %1968 = vst [vmem:[#allocation8] sm:$0xff] %v1967_v56 }
 0x45e   :  { %2636 = shalt.err (!%p2633_p6)
}
 0x45f   :  { %s2637_s15 = scalar_lea.hbm %s2806_s3, 128 }
 0x460   :  { %p2638_p7 = scmp.ne.s32.totalorder %s2806_s3, %s2637_s15  ;;  %p2641_p8 = scmp.lt.u32.totalorder %s2637_s15, %s2806_s3 }
 0x462   :  { %p2643_p9 = pnand %p2641_p8, %p2638_p7 }
 0x464   :  { %2646 = shalt.err (!%p2643_p9)
}
 0x465   :  { %1978 = dma.vmem_to_hbm [thread:$0]  %s1976_s11, 128, %s2806_s3, [#allocation5]  }
 0x466   :  { %2651 = dma.done.wait [#allocation5], 128  }
 0x467   :  { %2652 = vsyncadd [#allocation5], 4294967168 }
 0x468   :  { %1982 = vsyncpa [#allocation4], 1 }
 0x469   :  { %1983 = vsyncpa [#allocation7], 1 }
 0x46a   :  { %1984 = vsyncpa [#allocation5], 1 }

</bundles_post_ra>
